<compile_context>
chip_gen: v7x
topology: tpu7x:2x2x1
jax: 0.10.0
libtpu: 0.0.40
codegen_flags: <defaults>
</compile_context>

<pallas_src>
import jax
import jax.numpy as jnp
from jax.experimental import pallas as pl
from jax.experimental.pallas import tpu as pltpu


def _round_up(x, m):
    return (x + m - 1) // m * m


def _cdiv(a, b):
    return -(-a // b)


def _patch_embed_kernel(p_ref, w_ref, b_ref, o_ref):
    # One MXU matmul per M-tile: bf16 inputs, fp32 accumulation, fp32 bias add
    # on the VPU, lane-dense (N_pad % 128 == 0) store in the output dtype.
    acc = jnp.dot(p_ref[...], w_ref[...], preferred_element_type=jnp.float32)
    o_ref[...] = (acc + b_ref[...]).astype(o_ref.dtype)


def patch_embed_forward(x, weight, bias, *,
                        kernel_size=(7, 7), stride=(4, 4), padding=(3, 3),
                        tile_m=1024, out_dtype=jnp.bfloat16, channels_last=True):
    """PatchEmbed.forward: norm(proj(x)) with norm=Identity.

    Input is NCHW.  Returns tokens-last [B, H_out, W_out, embed_dim] by default
    (lane-dense, what a token consumer wants); channels_last=False returns the
    raw nn.Conv2d NCHW layout instead.
    """
    B, C, H, W = x.shape
    E, Cw, kh, kw = weight.shape
    assert (kh, kw) == tuple(kernel_size) and Cw == C
    sh, sw = stride
    ph, pw = padding
    H_out = (H + 2 * ph - kh) // sh + 1
    W_out = (W + 2 * pw - kw) // sw + 1

    # ---- glue: pad + im2col, emitted as a single bf16 gather in the final
    # [M, K] layout (strided NHWC slices stacked on the minor axis; no explicit
    # transpose of the patch tensor, no extra zero-fill pass). ----
    xp = jnp.transpose(x, (0, 2, 3, 1))                       # NHWC
    xp = jnp.pad(xp, ((0, 0), (ph, ph), (pw, pw), (0, 0))).astype(jnp.bfloat16)
    cols = [xp[:, i:i + sh * H_out:sh, j:j + sw * W_out:sw, :]
            for i in range(kh) for j in range(kw)]
    pat = jnp.stack(cols, axis=-1)                            # [B, Ho, Wo, C, kh*kw]
    pat = pat.reshape(B * H_out * W_out, C * kh * kw)         # [M, K], k = c*kh*kw + i*kw + j

    M, K = pat.shape
    N = E
    N_pad = _round_up(N, 128)     # lane-dense output -> unmasked stores; K/M stay unpadded

    # ---- M tiling: multiples of 16 (bf16 sublane packing); even tile count so
    # the "parallel" axis splits evenly across v7x's two TensorCores. ----
    TM = min(_round_up(tile_m, 16), _round_up(M, 16))
    grid_m = _cdiv(M, TM)
    if grid_m > 1 and grid_m % 2 == 1:
        TM = _round_up(_cdiv(M, grid_m + 1), 16)
        grid_m = _cdiv(M, TM)

    # ---- weight / bias, padded only along N (tiny, one-off) ----
    w2d = weight.reshape(E, C * kh * kw).astype(jnp.bfloat16)        # [E, K]
    w_p = jnp.pad(w2d.T, ((0, 0), (0, N_pad - N)))                   # [K, N_pad]
    b_p = jnp.pad(bias.astype(jnp.float32), (0, N_pad - N)).reshape(1, N_pad)

    # ---- VMEM budget: double-buffered pat/out tiles + resident weight/bias,
    # clamped to the chip's physical VMEM. ----
    out_bytes = jnp.dtype(out_dtype).itemsize
    K_v = _round_up(K, 128)                       # in-VMEM lane-padded footprint
    vmem_need = (2 * (TM * K_v * 2 + TM * N_pad * out_bytes)
                 + K_v * N_pad * 2 + N_pad * 4)
    try:
        phys = int(pltpu.get_tpu_info().vmem_capacity_bytes)
    except Exception:
        phys = 64 << 20                           # v7x worst case
    cap = min(phys - (8 << 20), 100 << 20)
    vmem_limit = int(min(max(2 * vmem_need, 16 << 20), cap))

    cost = pl.CostEstimate(
        flops=2 * M * K * N_pad,
        bytes_accessed=(M * K * 2 + K * N_pad * 2 + N_pad * 4
                        + M * N_pad * out_bytes),
        transcendentals=0,
    )

    out = pl.pallas_call(
        _patch_embed_kernel,
        out_shape=jax.ShapeDtypeStruct((M, N_pad), out_dtype),
        grid_spec=pltpu.PrefetchScalarGridSpec(
            num_scalar_prefetch=0,
            grid=(grid_m,),
            in_specs=[
                pl.BlockSpec((TM, K), lambda i: (i, 0)),       # streamed M tiles
                pl.BlockSpec((K, N_pad), lambda i: (0, 0)),    # VMEM-resident weight
                pl.BlockSpec((1, N_pad), lambda i: (0, 0)),    # VMEM-resident bias
            ],
            out_specs=pl.BlockSpec((TM, N_pad), lambda i: (i, 0)),
        ),
        compiler_params=pltpu.CompilerParams(
            dimension_semantics=("parallel",),   # M tiles split across TCs on v7x
            vmem_limit_bytes=vmem_limit,
        ),
        cost_estimate=cost,
    )(pat, w_p, b_p)

    if N_pad != N:
        out = out[:, :N]
    out = out.reshape(B, H_out, W_out, N)          # tokens-last, no relayout pass
    if not channels_last:
        out = jnp.transpose(out, (0, 3, 1, 2))     # literal nn.Conv2d NCHW layout
    return out


if __name__ == "__main__":
    # Small deterministic config: batch=2, in_chans=4, 16x16 image, embed_dim=32.
    B, C, H, W = 2, 4, 16, 16
    E = 32
    kernel_size, stride, padding = (7, 7), (4, 4), (3, 3)

    key = jax.random.PRNGKey(0)
    kx, kw_, kb = jax.random.split(key, 3)
    x = jax.random.normal(kx, (B, C, H, W), dtype=jnp.float32)
    weight = jax.random.normal(kw_, (E, C, *kernel_size), dtype=jnp.float32) * 0.02
    bias = jax.random.normal(kb, (E,), dtype=jnp.float32) * 0.02

    out = patch_embed_forward(x, weight, bias,
                              kernel_size=kernel_size, stride=stride, padding=padding)
    out = jax.block_until_ready(out)

    Ho = (H + 2 * padding[0] - kernel_size[0]) // stride[0] + 1
    Wo = (W + 2 * padding[1] - kernel_size[1]) // stride[1] + 1
    assert out.shape == (B, Ho, Wo, E), out.shape
    assert out.dtype == jnp.bfloat16, out.dtype

    # Tight check vs a conv reference using the same bf16 inputs / fp32 accumulation.
    ref_bf16 = jax.lax.conv_general_dilated(
        x.astype(jnp.bfloat16), weight.astype(jnp.bfloat16),
        window_strides=stride, padding=[padding, padding],
        dimension_numbers=("NCHW", "OIHW", "NCHW"),
        preferred_element_type=jnp.float32,
    ) + bias[None, :, None, None]
    # Loose sanity check vs the full-fp32 conv (bf16 quantization error only).
    ref_f32 = jax.lax.conv_general_dilated(
        x, weight, window_strides=stride, padding=[padding, padding],
        dimension_numbers=("NCHW", "OIHW", "NCHW"),
    ) + bias[None, :, None, None]
    ref_bf16 = jnp.transpose(ref_bf16, (0, 2, 3, 1))   # -> tokens-last like the kernel
    ref_f32 = jnp.transpose(ref_f32, (0, 2, 3, 1))

    out_f32 = out.astype(jnp.float32)
    assert jnp.allclose(out_f32, ref_bf16, atol=2e-2, rtol=2e-2), \
        "mismatch vs bf16 conv reference"
    assert jnp.allclose(out_f32, ref_f32, atol=6e-2, rtol=6e-2), \
        "mismatch vs fp32 conv reference"

    print("KERNEL_OK")
</pallas_src>

<mosaic_0001>
module attributes {stable_mosaic.version = 11 : i64} {
  func.func @_patch_embed_kernel(%arg0: i32, %arg1: memref<32x196xbf16, #tpu.memory_space<vmem>>, %arg2: memref<196x128xbf16, #tpu.memory_space<vmem>>, %arg3: memref<1x128xf32, #tpu.memory_space<vmem>>, %arg4: memref<32x128xbf16, #tpu.memory_space<vmem>>) attributes {dimension_semantics = [#tpu.dimension_semantics<parallel>], iteration_bounds = array<i64: 1>, scalar_prefetch = 0 : i64, scratch_operands = 0 : i64, tpu.core_type = #tpu.core_type<tc>, window_params = [{transform_indices = @transform_0, window_bounds = array<i64: 32, 196>}, {pipeline_mode = #tpu.pipeline_mode<synchronous>, transform_indices = @transform_1, window_bounds = array<i64: 196, 128>}, {pipeline_mode = #tpu.pipeline_mode<synchronous>, transform_indices = @transform_2, window_bounds = array<i64: 1, 128>}, {transform_indices = @transform_3, window_bounds = array<i64: 32, 128>}]} {
    %c0 = arith.constant 0 : index
    %c0_0 = arith.constant 0 : index
    %0 = vector.load %arg1[%c0, %c0_0] : memref<32x196xbf16, #tpu.memory_space<vmem>>, vector<32x196xbf16>
    %c0_1 = arith.constant 0 : index
    %c0_2 = arith.constant 0 : index
    %1 = vector.load %arg2[%c0_1, %c0_2] : memref<196x128xbf16, #tpu.memory_space<vmem>>, vector<196x128xbf16>
    %cst = arith.constant dense<0.000000e+00> : vector<32x128xf32>
    %2 = tpu.matmul %0, %1, %cst {dimension_numbers = #tpu.dot_dimension_numbers<[1], [0], [0], [1], [0, 0, 1, 1], [], []>} : vector<32x196xbf16>, vector<196x128xbf16>, vector<32x128xf32> -> vector<32x128xf32>
    %c0_3 = arith.constant 0 : index
    %c0_4 = arith.constant 0 : index
    %3 = vector.load %arg3[%c0_3, %c0_4] : memref<1x128xf32, #tpu.memory_space<vmem>>, vector<1x128xf32>
    %4 = vector.broadcast %3 : vector<1x128xf32> to vector<32x128xf32>
    %5 = arith.addf %2, %4 : vector<32x128xf32>
    %6 = arith.truncf %5 : vector<32x128xf32> to vector<32x128xbf16>
    %c0_5 = arith.constant 0 : index
    %c0_6 = arith.constant 0 : index
    %7 = vector.load %arg4[%c0_5, %c0_6] : memref<32x128xbf16, #tpu.memory_space<vmem>>, vector<32x128xbf16>
    tpu.vector_store %arg4[%c0_5, %c0_6], %6 {strides = array<i32>} : memref<32x128xbf16, #tpu.memory_space<vmem>>, vector<32x128xbf16>,
    return
  }
  func.func @transform_0(%arg0: i32) -> (i32, i32) {
    %c0_i32 = arith.constant 0 : i32
    %c0_i32_0 = arith.constant 0 : i32
    return %arg0, %c0_i32 : i32, i32
  }
  func.func @transform_1(%arg0: i32) -> (i32, i32) {
    %c0_i32 = arith.constant 0 : i32
    %c0_i32_0 = arith.constant 0 : i32
    %c0_i32_1 = arith.constant 0 : i32
    return %c0_i32, %c0_i32_0 : i32, i32
  }
  func.func @transform_2(%arg0: i32) -> (i32, i32) {
    %c0_i32 = arith.constant 0 : i32
    %c0_i32_0 = arith.constant 0 : i32
    %c0_i32_1 = arith.constant 0 : i32
    return %c0_i32, %c0_i32_0 : i32, i32
  }
  func.func @transform_3(%arg0: i32) -> (i32, i32) {
    %c0_i32 = arith.constant 0 : i32
    %c0_i32_0 = arith.constant 0 : i32
    return %arg0, %c0_i32 : i32, i32
  }
}

</mosaic_0001>

<bundles_post_ra>
// kernel: tpu_custom_call.1
= control target key start
LH: loop header
LB: loop body
LE: loop exit
PB: predicated region body
PF: predicated region fallthrough
CT: control target
= control target key end

     0   :  { %8 = vsyncpa [#allocation3], 0  ;;  %s534_s0 = inlined_call_operand.hbm [shape: bf16[32,196], index: 0, kind: input, shape index: {}]   ;;  %s535_s1 = inlined_call_operand.hbm [shape: bf16[196,128], index: 1, kind: input, shape index: {}]   ;;  %s536_s2 = inlined_call_operand.vmem [shape: f32[1,128], index: 2, kind: input, shape index: {}]   ;;  %s537_s3 = inlined_call_operand.hbm [shape: bf16[32,128], index: 3, kind: output, shape index: {}]  }
   0x1   :  { %9 = vsyncpa [#allocation6], 0 }
   0x2   :  { %10 = vsyncpa [#allocation4], 0  ;;  %s435_s12 = smov [#allocation2]   ;;  %s363_s16 = scalar_lea.hbm %s534_s0, 512 }
   0x3   :  { %s16_s13 = sshll.u32 %s435_s12, 4  ;;  %p364_p0 = scmp.ne.s32.totalorder %s534_s0, %s363_s16  ;;  %s17_s13 = int_to_ptr.vmem [resolvable:$true] %s16_s13 }
   0x4   :  { %p367_p1 = scmp.lt.u32.totalorder %s363_s16, %s534_s0 }
   0x6   :  { %p369_p2 = pnand %p367_p1, %p364_p0 }
   0x8   :  { %372 = shalt.err (!%p369_p2)
}
   0x9   :  { %s373_s21 = scalar_lea.vmem %s17_s13, 512  ;;  %p378_p4 = scmp.lt.s32.totalorder %s17_s13, %s17_s13 }
   0xa   :  { %p374_p3 = scmp.ne.s32.totalorder %s17_s13, %s373_s21  ;;  %p379_p5 = scmp.lt.s32.totalorder %s373_s21, %s373_s21 }
   0xc   :  { %p380_p6 = por %p379_p5, %p378_p4 }
   0xe   :  { %p381_p7 = pnand %p380_p6, %p374_p3 }
  0x10   :  { %384 = shalt.err (!%p381_p7)
}
  0x11   :  { %s436_s22 = smov 128   ;;  %s437_s23 = smov 8  }
  0x12   :  { %22 = dma.hbm_to_vmem [thread:$0]  %s534_s0, 512, %s17_s13, [#allocation3], %s436_s22, %s436_s22, %s437_s23  }
  0x13   :  { %s438_s26 = smov [#allocation5]   ;;  %s385_s30 = scalar_lea.hbm %s535_s1, 1600 }
  0x14   :  { %s28_s27 = sshll.u32 %s438_s26, 4  ;;  %p386_p8 = scmp.ne.s32.totalorder %s535_s1, %s385_s30  ;;  %s29_s27 = int_to_ptr.vmem [resolvable:$true] %s28_s27 }
  0x15   :  { %p389_p9 = scmp.lt.u32.totalorder %s385_s30, %s535_s1 }
  0x17   :  { %p391_p10 = pnand %p389_p9, %p386_p8 }
  0x19   :  { %394 = shalt.err (!%p391_p10)
}
  0x1a   :  { %s395_s8 = scalar_lea.vmem %s29_s27, 1600  ;;  %p400_p12 = scmp.lt.s32.totalorder %s29_s27, %s29_s27 }
  0x1b   :  { %p396_p11 = scmp.ne.s32.totalorder %s29_s27, %s395_s8  ;;  %p401_p13 = scmp.lt.s32.totalorder %s395_s8, %s395_s8 }
  0x1d   :  { %p402_p0 = por %p401_p13, %p400_p12 }
  0x1f   :  { %p403_p1 = pnand %p402_p0, %p396_p11 }
  0x21   :  { %406 = shalt.err (!%p403_p1)
}
  0x22   :  { %s439_s0 = smov 64   ;;  %s440_s9 = smov 4  }
  0x23   :  { %34 = dma.hbm_to_vmem [thread:$0]  %s535_s1, 1600, %s29_s27, [#allocation6], %s439_s0, %s439_s0, %s440_s9  }
  0x24   :  { %429 = dma.done.wait [#allocation3], 512  }
  0x25   :  { %430 = vsyncadd [#allocation3], 4294966784 }
  0x26   :  { %431 = dma.done.wait [#allocation6], 1600  }
  0x27   :  { %432 = vsyncadd [#allocation6], 4294965696  ;;  %v441_v0 = vmov 0   ;;  %v344_v1 = vld [vmem:[#allocation5] sm:$0xff]   ;;  %v345_v2 = vld [vmem:[#allocation5 + $0x8] sm:$0xff]   ;;  %vm173_vm0 = vcmask 556032  }
  0x28   :  { %184 = vmatprep.subr.bf16.mxu0 %v441_v0  ;;  %310 = vmatprep.subr.bf16.mxu1 %v441_v0  ;;  %v346_v3 = vld [vmem:[#allocation5 + $0x10] sm:$0xff]   ;;  %v347_v4 = vld [vmem:[#allocation5 + $0x18] sm:$0xff]   ;;  %v359_v5 = vld [vmem:[#allocation2 + $0x4] ss:$8 sps:$4 sm:$0xff]   ;;  %vm180_vm1 = vcmask 1041408   ;;  %s442_s13 = smov [#allocation7]  }
  0x29   :  { %185 = vmatpush1.bf16.msra.mxu0 %v344_v1  ;;  %323 = vmatpush1.bf16.msra.mxu1 %v344_v1  ;;  %v348_v6 = vld [vmem:[#allocation5 + $0x20] sm:$0xff]   ;;  %v362_v7 = vld [vmem:[#allocation2 + $0x14] ss:$8 sps:$4 sm:$0xff]   ;;  %v349_v8 = vld [vmem:[#allocation5 + $0x28] sm:$0xff]   ;;  %s258_s14 = sshll.u32 %s442_s13, 4  ;;  %s259_s14 = int_to_ptr.vmem [resolvable:$true] %s258_s14 }
  0x2a   :  { %186 = vmatprep.subr.bf16.mxu0 %v441_v0  ;;  %311 = vmatprep.subr.bf16.mxu1 %v441_v0  ;;  %v350_v9 = vld [vmem:[#allocation5 + $0x30] sm:$0xff]   ;;  %v351_v10 = vld [vmem:[#allocation5 + $0x38] sm:$0xff]   ;;  %v352_v11 = vld [vmem:[#allocation5 + $0x40] sm:$0xff]   ;;  %p412_p3 = scmp.lt.s32.totalorder %s259_s14, %s259_s14 }
  0x2b   :  { %289 = vmatprep.mubr.msk.bf16.mxu0 %vm173_vm0, %v359_v5  ;;  %290 = vmatprep.mubr.msk.bf16.mxu1 %vm173_vm0, %v362_v7  ;;  %v353_v12 = vld [vmem:[#allocation5 + $0x48] sm:$0xff]   ;;  %v354_v13 = vld [vmem:[#allocation5 + $0x50] sm:$0xff]   ;;  %v355_v14 = vld [vmem:[#allocation5 + $0x58] sm:$0xff]  }
  0x2c   :  { %v356_v15 = vld [vmem:[#allocation5 + $0x60] ss:$0 sps:$4 sm:$0x33]   ;;  %v360_v18 = vld [vmem:[#allocation2 + $0x10] ss:$8 sps:$4 sm:$0xff]  }
  0x2d   :  { %187 = vmatpush1.bf16.msra.mxu0 %v345_v2  ;;  %324 = vmatpush1.bf16.msra.mxu1 %v345_v2  ;;  %v182_v16 = vsel %vm180_vm1, %v356_v15, 0  ;;  %v357_v17 = vld [vmem:[#allocation2] ss:$8 sps:$4 sm:$0xff]  }
  0x2e   :  { %188 = vmatprep.subr.bf16.mxu0 %v441_v0  ;;  %312 = vmatprep.subr.bf16.mxu1 %v441_v0  ;;  %v271_v19 = vld [vmem:[%s536_s2] ss:$0 sm:$0xff]  ;;  %s407_s2 = scalar_lea.vmem %s259_s14, 256 }
  0x2f   :  { %p408_p2 = scmp.ne.s32.totalorder %s259_s14, %s407_s2  ;;  %p413_p4 = scmp.lt.s32.totalorder %s407_s2, %s407_s2 }
  0x31   :  { %189 = vmatpush1.bf16.msra.mxu0 %v346_v3  ;;  %325 = vmatpush1.bf16.msra.mxu1 %v346_v3  ;;  %p414_p5 = por %p413_p4, %p412_p3 }
  0x32   :  { %190 = vmatprep.subr.bf16.mxu0 %v441_v0  ;;  %313 = vmatprep.subr.bf16.mxu1 %v441_v0 }
  0x33   :  { %p415_p6 = pnand %p414_p5, %p408_p2 }
  0x35   :  { %191 = vmatpush1.bf16.msra.mxu0 %v347_v4  ;;  %326 = vmatpush1.bf16.msra.mxu1 %v347_v4 }
  0x36   :  { %192 = vmatprep.subr.bf16.mxu0 %v441_v0  ;;  %314 = vmatprep.subr.bf16.mxu1 %v441_v0 }
  0x39   :  { %193 = vmatpush1.bf16.msra.mxu0 %v348_v6  ;;  %327 = vmatpush1.bf16.msra.mxu1 %v348_v6 }
  0x3a   :  { %194 = vmatprep.subr.bf16.mxu0 %v441_v0  ;;  %315 = vmatprep.subr.bf16.mxu1 %v441_v0 }
  0x3d   :  { %195 = vmatpush1.bf16.msra.mxu0 %v349_v8  ;;  %328 = vmatpush1.bf16.msra.mxu1 %v349_v8 }
  0x3e   :  { %196 = vmatprep.subr.bf16.mxu0 %v441_v0  ;;  %316 = vmatprep.subr.bf16.mxu1 %v441_v0 }
  0x41   :  { %197 = vmatpush1.bf16.msra.mxu0 %v350_v9  ;;  %329 = vmatpush1.bf16.msra.mxu1 %v350_v9 }
  0x42   :  { %198 = vmatprep.subr.bf16.mxu0 %v441_v0  ;;  %317 = vmatprep.subr.bf16.mxu1 %v441_v0 }
  0x45   :  { %199 = vmatpush1.bf16.msra.mxu0 %v351_v10  ;;  %330 = vmatpush1.bf16.msra.mxu1 %v351_v10 }
  0x46   :  { %200 = vmatprep.subr.bf16.mxu0 %v441_v0  ;;  %318 = vmatprep.subr.bf16.mxu1 %v441_v0 }
  0x49   :  { %201 = vmatpush1.bf16.msra.mxu0 %v352_v11  ;;  %331 = vmatpush1.bf16.msra.mxu1 %v352_v11 }
  0x4a   :  { %202 = vmatprep.subr.bf16.mxu0 %v441_v0  ;;  %319 = vmatprep.subr.bf16.mxu1 %v441_v0 }
  0x4d   :  { %203 = vmatpush1.bf16.msra.mxu0 %v353_v12  ;;  %332 = vmatpush1.bf16.msra.mxu1 %v353_v12 }
  0x4e   :  { %204 = vmatprep.subr.bf16.mxu0 %v441_v0  ;;  %320 = vmatprep.subr.bf16.mxu1 %v441_v0 }
  0x51   :  { %205 = vmatpush1.bf16.msra.mxu0 %v354_v13  ;;  %333 = vmatpush1.bf16.msra.mxu1 %v354_v13 }
  0x52   :  { %206 = vmatprep.subr.bf16.mxu0 %v441_v0  ;;  %321 = vmatprep.subr.bf16.mxu1 %v441_v0 }
  0x55   :  { %207 = vmatpush1.bf16.msra.mxu0 %v355_v14  ;;  %334 = vmatpush1.bf16.msra.mxu1 %v355_v14 }
  0x56   :  { %208 = vmatprep.subr.bf16.mxu0 %v441_v0  ;;  %322 = vmatprep.subr.bf16.mxu1 %v441_v0 }
  0x59   :  { %209 = vmatpush1.bf16.msra.mxu0 %v182_v16  ;;  %335 = vmatpush1.bf16.msra.mxu1 %v182_v16 }
  0x5c   :  { %217 = vmatmul.mubr.bf16.vlgmr.msra.gmra.mrb[0].mxu0 %v357_v17  ;;  %225 = vmatmul.mubr.bf16.vlgmr.msra.gmra.mrb[0].mxu1 %v360_v18 }
 0x12f   :  { %v218_v20 = vpop.f32.mrb[0].mxu0  ;;  %v226_v21 = vpop.f32.mrb[0].mxu1 }
 0x130   :  { %v220_v22 = vpop.f32.mrb[1].mxu0  ;;  %v228_v23 = vpop.f32.mrb[1].mxu1  ;;  %v219_v26 = vadd.f32 %v271_v19, %v218_v20  ;;  %v227_v27 = vadd.f32 %v271_v19, %v226_v21 }
 0x131   :  { %v221_v24 = vpop.f32.mrb[2].mxu0  ;;  %v229_v25 = vpop.f32.mrb[2].mxu1 }
 0x132   :  { %v222_v28 = vadd.f32 %v271_v19, %v221_v24  ;;  %v230_v29 = vadd.f32 %v271_v19, %v229_v25  ;;  %v223_v30 = vpop.f32.mrb[3].mxu0  ;;  %v231_v31 = vpop.f32.mrb[3].mxu1 }
 0x134   :  { %v302_v32 = vpack.c.bf16 %v222_v28, %v219_v26  ;;  %v307_v33 = vpack.c.bf16 %v230_v29, %v227_v27 }
 0x136   :  { %303 = vst [vmem:[#allocation7] sm:$0xff] %v302_v32   ;;  %309 = vst [vmem:[#allocation7 + $0x8] sm:$0xff] %v307_v33  }
 0x137   :  { %418 = shalt.err (!%p415_p6)
}
 0x138   :  { %s419_s17 = scalar_lea.hbm %s537_s3, 256 }
 0x139   :  { %p420_p7 = scmp.ne.s32.totalorder %s537_s3, %s419_s17  ;;  %p423_p8 = scmp.lt.u32.totalorder %s419_s17, %s537_s3 }
 0x13b   :  { %p425_p9 = pnand %p423_p8, %p420_p7 }
 0x13d   :  { %428 = shalt.err (!%p425_p9)
}
 0x13e   :  { %264 = dma.vmem_to_hbm [thread:$0]  %s259_s14, 256, %s537_s3, [#allocation4], %s439_s0, %s439_s0, %s440_s9  }
 0x13f   :  { %433 = dma.done.wait [#allocation4], 256  }
 0x140   :  { %434 = vsyncadd [#allocation4], 4294967040 }
 0x141   :  { %268 = vsyncpa [#allocation3], 1 }
 0x142   :  { %269 = vsyncpa [#allocation6], 1 }
 0x143   :  { %270 = vsyncpa [#allocation4], 1 }

</bundles_post_ra>
